<compile_context>
chip_gen: v7x
topology: tpu7x:2x2x1
jax: 0.10.0
libtpu: 0.0.40
codegen_flags: <defaults>
</compile_context>

<pallas_src>
import jax
import jax.numpy as jnp
from jax import lax
from jax.experimental import pallas as pl
from jax.experimental.pallas import tpu as pltpu


COMPUTE_DTYPE = jnp.bfloat16      # HBM storage / MXU-input dtype for the grouped tensors
_BN_EPS = 1e-5
_VMEM_LIMIT = 32 * 1024 * 1024    # explicit scoped-VMEM limit, safe on v5e/v6e/v7x
_TILE_BYTES = 3 * 1024 * 1024     # per-buffer tile budget (~12 MiB working set w/ dbl-buffering)


def _round_up(x, m):
    return ((x + m - 1) // m) * m


def _pick_group_tile(bs, k, c_pad, itemsize):
    """Largest tile of the B*S axis that divides bs, is a multiple of 8, and keeps a
    (tile, K, C) buffer under the byte budget.  Falls back to the full axis."""
    bytes_per_group = max(k * c_pad * itemsize, 1)
    max_rows = max(8, _TILE_BYTES // bytes_per_group)
    start = int(min(bs, max_rows, 512))
    for cand in range(start, 7, -1):
        if bs % cand == 0 and cand % 8 == 0:
            return cand
    return bs


# ---------------------------------------------------------------------------
# Pallas kernel 1: pairwise squared distance (the matmul in square_distance)
# ---------------------------------------------------------------------------
def _sqdist_kernel(src_ref, dst_ref, out_ref):
    # src_ref: (1, 8, TILE_S) rows = [x, y, z, |p|^2, 1, 0, 0, 0]
    # dst_ref: (1, 8, N)      rows = [-2x, -2y, -2z, 1, |q|^2, 0, 0, 0]
    # out[i, j] = -2 p_i.q_j + |p_i|^2 + |q_j|^2   -- a single MXU matmul
    dn = (((0,), (0,)), ((), ()))
    out_ref[0] = lax.dot_general(src_ref[0], dst_ref[0], dn,
                                 preferred_element_type=jnp.float32)


def square_distance_pallas(src, dst):
    """src: [B, S, 3], dst: [B, N, 3] -> [B, S, N] squared distances (matches torch)."""
    B, S, _ = src.shape
    _, N, _ = dst.shape
    src_t = jnp.transpose(src, (0, 2, 1)).astype(jnp.float32)           # (B, 3, S) lane-dense
    dst_t = jnp.transpose(dst, (0, 2, 1)).astype(jnp.float32)           # (B, 3, N) lane-dense
    s2 = jnp.sum(src_t * src_t, axis=1, keepdims=True)                  # (B, 1, S)
    d2 = jnp.sum(dst_t * dst_t, axis=1, keepdims=True)                  # (B, 1, N)
    zs = jnp.zeros((B, 3, S), jnp.float32)
    zn = jnp.zeros((B, 3, N), jnp.float32)
    src_aug = jnp.concatenate([src_t, s2, jnp.ones_like(s2), zs], axis=1)            # (B, 8, S)
    dst_aug = jnp.concatenate([-2.0 * dst_t, jnp.ones_like(d2), d2, zn], axis=1)     # (B, 8, N)

    if S % 256 == 0:
        tile_s = 256
    elif S % 128 == 0:
        tile_s = 128
    else:
        tile_s = S
    # TODO(synk): also tile N when N is very large (>~2k) to bound the (TILE_S, N) out block.
    return pl.pallas_call(
        _sqdist_kernel,
        out_shape=jax.ShapeDtypeStruct((B, S, N), jnp.float32),
        grid=(B, S // tile_s),
        in_specs=[
            pl.BlockSpec((1, 8, tile_s), lambda b, si: (b, 0, si)),
            pl.BlockSpec((1, 8, N), lambda b, si: (b, 0, 0)),
        ],
        out_specs=pl.BlockSpec((1, tile_s, N), lambda b, si: (b, si, 0)),
        compiler_params=pltpu.CompilerParams(
            dimension_semantics=("parallel", "parallel"),
            vmem_limit_bytes=_VMEM_LIMIT),
    )(src_aug, dst_aug)


# ---------------------------------------------------------------------------
# Pallas kernels 2-4: MSG branch, tiled over the B*S group axis
# ---------------------------------------------------------------------------
def _mm_stats_kernel(x_ref, w_ref, h_ref, stats_ref):
    """First layer: h = x @ w; accumulate global per-channel sum / sum-of-squares."""
    @pl.when(pl.program_id(0) == 0)
    def _():
        stats_ref[...] = jnp.zeros_like(stats_ref)

    t, k, cin = x_ref.shape
    x2 = x_ref[...].reshape(t * k, cin)                                   # tall-M 2D matmul
    h = jnp.dot(x2, w_ref[...], preferred_element_type=jnp.float32)      # (t*k, cout) f32
    s1 = jnp.sum(h, axis=0, keepdims=True)
    s2 = jnp.sum(h * h, axis=0, keepdims=True)
    stats_ref[...] += jnp.concatenate([s1, s2], axis=0)                   # (2, cout) accumulator
    h_ref[...] = h.reshape(t, k, h.shape[-1]).astype(h_ref.dtype)


def _bn_relu_mm_stats_kernel(x_ref, scale_ref, shift_ref, w_ref, h_ref, stats_ref):
    """Middle layers: a = relu(x*scale + shift) (BN folded), h = a @ w, accumulate stats."""
    @pl.when(pl.program_id(0) == 0)
    def _():
        stats_ref[...] = jnp.zeros_like(stats_ref)

    x = x_ref[...].astype(jnp.float32)                                    # elementwise in f32
    a = jnp.maximum(x * scale_ref[...] + shift_ref[...], 0.0)
    t, k, cin = a.shape
    a2 = a.reshape(t * k, cin).astype(w_ref.dtype)
    h = jnp.dot(a2, w_ref[...], preferred_element_type=jnp.float32)
    s1 = jnp.sum(h, axis=0, keepdims=True)
    s2 = jnp.sum(h * h, axis=0, keepdims=True)
    stats_ref[...] += jnp.concatenate([s1, s2], axis=0)
    h_ref[...] = h.reshape(t, k, h.shape[-1]).astype(h_ref.dtype)


def _bn_relu_maxpool_kernel(x_ref, scale_ref, shift_ref, out_ref):
    """Last phase: a = relu(x*scale + shift); torch.max over the K (neighbor) axis."""
    x = x_ref[...].astype(jnp.float32)
    a = jnp.maximum(x * scale_ref[...] + shift_ref[...], 0.0)
    out_ref[...] = jnp.max(a, axis=1)


def _matmul_stats_call(x, w, scale, shift):
    """x: (BS, K, Cin_pad), w: (Cin_pad, Cout_pad) -> (h_lin (BS,K,Cout_pad), stats (2,Cout_pad))."""
    bs, k, cin = x.shape
    cout = w.shape[1]
    itemsize = jnp.dtype(x.dtype).itemsize
    tile = _pick_group_tile(bs, k, max(cin, cout), itemsize)
    grid = (bs // tile,)
    x_spec = pl.BlockSpec((tile, k, cin), lambda i: (i, 0, 0))
    w_spec = pl.BlockSpec((cin, cout), lambda i: (0, 0))
    vec_spec = pl.BlockSpec((1, cin), lambda i: (0, 0))
    out_specs = (pl.BlockSpec((tile, k, cout), lambda i: (i, 0, 0)),
                 pl.BlockSpec((2, cout), lambda i: (0, 0)))              # resident accumulator
    out_shape = (jax.ShapeDtypeStruct((bs, k, cout), x.dtype),
                 jax.ShapeDtypeStruct((2, cout), jnp.float32))
    params = pltpu.CompilerParams(
        # the stats accumulator is resident across the group axis -> must be "arbitrary"
        dimension_semantics=("arbitrary",),
        vmem_limit_bytes=_VMEM_LIMIT)
    if scale is None:
        return pl.pallas_call(
            _mm_stats_kernel, out_shape=out_shape, grid=grid,
            in_specs=[x_spec, w_spec], out_specs=out_specs,
            compiler_params=params)(x, w)
    return pl.pallas_call(
        _bn_relu_mm_stats_kernel, out_shape=out_shape, grid=grid,
        in_specs=[x_spec, vec_spec, vec_spec, w_spec], out_specs=out_specs,
        compiler_params=params)(x, scale, shift, w)


def _bn_relu_maxpool_call(x, scale, shift):
    bs, k, cin = x.shape
    itemsize = jnp.dtype(x.dtype).itemsize
    tile = _pick_group_tile(bs, k, cin, itemsize)
    return pl.pallas_call(
        _bn_relu_maxpool_kernel,
        out_shape=jax.ShapeDtypeStruct((bs, cin), jnp.float32),
        grid=(bs // tile,),
        in_specs=[pl.BlockSpec((tile, k, cin), lambda i: (i, 0, 0)),
                  pl.BlockSpec((1, cin), lambda i: (0, 0)),
                  pl.BlockSpec((1, cin), lambda i: (0, 0))],
        out_specs=pl.BlockSpec((tile, cin), lambda i: (i, 0)),
        compiler_params=pltpu.CompilerParams(
            dimension_semantics=("parallel",),
            vmem_limit_bytes=_VMEM_LIMIT),
    )(x, scale, shift)


def branch_forward(grouped, branch_params):
    """grouped: [B*S, K, C0] f32 -> pooled features [B*S, C_last] f32 (PyTorch semantics)."""
    bs, k, c0 = grouped.shape
    count = float(bs * k)                                   # true BN count (B*K*S), no padding
    cin, cin_pad = c0, _round_up(c0, 128)
    x = jnp.pad(grouped.astype(jnp.float32),
                ((0, 0), (0, 0), (0, cin_pad - c0))).astype(COMPUTE_DTYPE)
    scale = shift = None
    for (w, _b, gamma, beta) in branch_params:
        # NOTE: conv bias _b is exactly cancelled by training-mode BatchNorm -> dropped.
        cout = w.shape[1]
        cout_pad = _round_up(cout, 128)
        w_pad = jnp.zeros((cin_pad, cout_pad), COMPUTE_DTYPE)
        w_pad = w_pad.at[:cin, :cout].set(w.astype(COMPUTE_DTYPE))

        h_lin, stats = _matmul_stats_call(x, w_pad, scale, shift)
        mean = stats[0] / count
        var = jnp.maximum(stats[1] / count - mean * mean, 0.0)           # single-pass, clamped
        gamma_pad = jnp.zeros((cout_pad,), jnp.float32).at[:cout].set(gamma.astype(jnp.float32))
        beta_pad = jnp.zeros((cout_pad,), jnp.float32).at[:cout].set(beta.astype(jnp.float32))
        scale_vec = gamma_pad * lax.rsqrt(var + _BN_EPS)                  # gamma folded into rsqrt
        shift_vec = beta_pad - mean * scale_vec
        scale = scale_vec.reshape(1, cout_pad)
        shift = shift_vec.reshape(1, cout_pad)

        x = h_lin
        cin, cin_pad = cout, cout_pad

    pooled = _bn_relu_maxpool_call(x, scale, shift)                       # (bs, cout_pad)
    return pooled[:, :cin]                                                # drop lane padding


# ---------------------------------------------------------------------------
# Plain-JAX glue (sampling / grouping: sequential + data-dependent gather/sort)
# ---------------------------------------------------------------------------
def farthest_point_sample(xyz, npoint, key):
    # TODO(synk): FPS is an inherently sequential data-dependent argmax loop; kept in plain JAX.
    B, N, _ = xyz.shape
    distance = jnp.full((B, N), 1e10, dtype=jnp.float32)
    farthest = jax.random.randint(key, (B,), 0, N, dtype=jnp.int32)
    batch_idx = jnp.arange(B)
    centroids = jnp.zeros((B, npoint), dtype=jnp.int32)

    def body(i, carry):
        centroids, distance, farthest = carry
        centroids = centroids.at[:, i].set(farthest)
        centroid = xyz[batch_idx, farthest, :][:, None, :]               # (B, 1, 3)
        dist = jnp.sum((xyz - centroid) ** 2, axis=-1)                   # (B, N)
        distance = jnp.minimum(distance, dist)
        farthest = jnp.argmax(distance, axis=-1).astype(jnp.int32)
        return centroids, distance, farthest

    centroids, _, _ = lax.fori_loop(0, npoint, body, (centroids, distance, farthest))
    return centroids


def index_points(points, idx):
    """points: [B, N, C], idx: [B, ...] -> [B, ..., C]"""
    # TODO(synk): at large sizes this gather should move into the branch kernel via
    # PrefetchScalarGridSpec scalar-prefetched group indices instead of materializing in HBM.
    B = points.shape[0]
    C = points.shape[-1]
    idx_flat = idx.reshape(B, -1)
    out = jnp.take_along_axis(points, idx_flat[..., None], axis=1)
    return out.reshape(idx.shape + (C,))


def query_ball_point(radius, nsample, N, sqrdists):
    # TODO(synk): replace the full sort over N with a masked first-K selection (O(N)).
    B, S, _ = sqrdists.shape
    group_idx = jnp.broadcast_to(jnp.arange(N, dtype=jnp.int32), (B, S, N))
    group_idx = jnp.where(sqrdists > radius ** 2, jnp.int32(N), group_idx)
    group_idx = jnp.sort(group_idx, axis=-1)[:, :, :nsample]
    group_first = group_idx[:, :, 0:1]
    group_idx = jnp.where(group_idx == N, group_first, group_idx)
    return group_idx


# ---------------------------------------------------------------------------
# Full module forward
# ---------------------------------------------------------------------------
def pointnet_sa_msg_forward(xyz, points, params, npoint, radius_list, nsample_list, fps_key):
    """xyz: [B, 3, N], points: [B, D, N] (PyTorch channel-first conventions)."""
    xyz_t = jnp.transpose(xyz, (0, 2, 1)).astype(jnp.float32)            # [B, N, 3]
    points_t = None
    if points is not None:
        points_t = jnp.transpose(points, (0, 2, 1)).astype(jnp.float32)  # [B, N, D]

    B, N, _ = xyz_t.shape
    S = npoint
    fps_idx = farthest_point_sample(xyz_t, S, fps_key)                   # [B, S]
    new_xyz = index_points(xyz_t, fps_idx)                               # [B, S, 3]
    sqrdists = square_distance_pallas(new_xyz, xyz_t)                    # [B, S, N]  (Pallas)

    new_points_list = []
    for i, radius in enumerate(radius_list):
        K = nsample_list[i]
        group_idx = query_ball_point(radius, K, N, sqrdists)             # [B, S, K]
        grouped_xyz = index_points(xyz_t, group_idx) - new_xyz[:, :, None, :]   # [B, S, K, 3]
        if points_t is not None:
            grouped_points = jnp.concatenate(
                [index_points(points_t, group_idx), grouped_xyz], axis=-1)      # [B, S, K, D+3]
        else:
            grouped_points = grouped_xyz
        c0 = grouped_points.shape[-1]
        pooled = branch_forward(grouped_points.reshape(B * S, K, c0), params[i])  # (Pallas)
        new_points_list.append(pooled.reshape(B, S, -1))

    new_xyz_out = jnp.transpose(new_xyz, (0, 2, 1))                      # [B, 3, S]
    new_points_concat = jnp.transpose(
        jnp.concatenate(new_points_list, axis=-1), (0, 2, 1))            # [B, sum(C_out), S]
    return new_xyz_out, new_points_concat


def init_params(key, in_channel, mlp_list):
    params = []
    for mlp in mlp_list:
        last = in_channel + 3
        branch = []
        for out_c in mlp:
            key, k1, k2 = jax.random.split(key, 3)
            w = jax.random.normal(k1, (last, out_c), jnp.float32) * 0.1  # conv weight (Cin, Cout)
            b = jax.random.normal(k2, (out_c,), jnp.float32) * 0.1       # conv bias (cancelled by BN)
            gamma = jnp.ones((out_c,), jnp.float32)                      # BN weight
            beta = jnp.zeros((out_c,), jnp.float32)                      # BN bias
            branch.append((w, b, gamma, beta))
            last = out_c
        params.append(branch)
    return params


if __name__ == "__main__":
    key = jax.random.PRNGKey(0)
    k_xyz, k_pts, k_par, k_fps = jax.random.split(key, 4)

    B, N, D = 2, 32, 4
    npoint = 16
    radius_list = [0.2, 0.4]
    nsample_list = [8, 16]
    mlp_list = [[8, 16], [16, 32]]

    xyz = jax.random.uniform(k_xyz, (B, 3, N), jnp.float32)              # [B, C=3, N]
    points = jax.random.normal(k_pts, (B, D, N), jnp.float32)            # [B, D, N]
    params = init_params(k_par, D, mlp_list)

    new_xyz, new_points = pointnet_sa_msg_forward(
        xyz, points, params, npoint, radius_list, nsample_list, k_fps)
    (new_xyz, new_points) = jax.block_until_ready((new_xyz, new_points))

    assert new_xyz.shape == (B, 3, npoint), new_xyz.shape
    assert new_points.shape == (B, sum(m[-1] for m in mlp_list), npoint), new_points.shape
    print("KERNEL_OK")
</pallas_src>

<mosaic_0001>
module attributes {stable_mosaic.version = 11 : i64} {
  func.func @_sqdist_kernel(%arg0: i32, %arg1: i32, %arg2: memref<1x8x16xf32, #tpu.memory_space<vmem>>, %arg3: memref<1x8x32xf32, #tpu.memory_space<vmem>>, %arg4: memref<1x16x32xf32, #tpu.memory_space<vmem>>) attributes {dimension_semantics = [#tpu.dimension_semantics<parallel>, #tpu.dimension_semantics<parallel>], iteration_bounds = array<i64: 2, 1>, scalar_prefetch = 0 : i64, scratch_operands = 0 : i64, tpu.core_type = #tpu.core_type<tc>, window_params = [{transform_indices = @transform_0, window_bounds = array<i64: 1, 8, 16>}, {transform_indices = @transform_1, window_bounds = array<i64: 1, 8, 32>}, {transform_indices = @transform_2, window_bounds = array<i64: 1, 16, 32>}]} {
    %c0 = arith.constant 0 : index
    %c0_0 = arith.constant 0 : index
    %c0_1 = arith.constant 0 : index
    %0 = vector.load %arg2[%c0, %c0_0, %c0_1] : memref<1x8x16xf32, #tpu.memory_space<vmem>>, vector<1x8x16xf32>
    %1 = vector.shape_cast %0 : vector<1x8x16xf32> to vector<8x16xf32>
    %c0_2 = arith.constant 0 : index
    %c0_3 = arith.constant 0 : index
    %c0_4 = arith.constant 0 : index
    %2 = vector.load %arg3[%c0_2, %c0_3, %c0_4] : memref<1x8x32xf32, #tpu.memory_space<vmem>>, vector<1x8x32xf32>
    %3 = vector.shape_cast %2 : vector<1x8x32xf32> to vector<8x32xf32>
    %cst = arith.constant dense<0.000000e+00> : vector<16x32xf32>
    %4 = tpu.matmul %1, %3, %cst {dimension_numbers = #tpu.dot_dimension_numbers<[0], [0], [1], [1], [0, 1, 1, 1], [], []>} : vector<8x16xf32>, vector<8x32xf32>, vector<16x32xf32> -> vector<16x32xf32>
    %c0_5 = arith.constant 0 : index
    %c0_6 = arith.constant 0 : index
    %c0_7 = arith.constant 0 : index
    %5 = vector.load %arg4[%c0_5, %c0_6, %c0_7] : memref<1x16x32xf32, #tpu.memory_space<vmem>>, vector<1x16x32xf32>
    %6 = vector.shape_cast %5 : vector<1x16x32xf32> to vector<16x32xf32>
    %7 = vector.shape_cast %4 : vector<16x32xf32> to vector<1x16x32xf32>
    tpu.vector_store %arg4[%c0_5, %c0_6, %c0_7], %7 {strides = array<i32>} : memref<1x16x32xf32, #tpu.memory_space<vmem>>, vector<1x16x32xf32>,
    return
  }
  func.func @transform_0(%arg0: i32, %arg1: i32) -> (i32, i32, i32) {
    %c0_i32 = arith.constant 0 : i32
    %c0_i32_0 = arith.constant 0 : i32
    return %arg0, %c0_i32, %arg1 : i32, i32, i32
  }
  func.func @transform_1(%arg0: i32, %arg1: i32) -> (i32, i32, i32) {
    %c0_i32 = arith.constant 0 : i32
    %c0_i32_0 = arith.constant 0 : i32
    %c0_i32_1 = arith.constant 0 : i32
    return %arg0, %c0_i32, %c0_i32_0 : i32, i32, i32
  }
  func.func @transform_2(%arg0: i32, %arg1: i32) -> (i32, i32, i32) {
    %c0_i32 = arith.constant 0 : i32
    %c0_i32_0 = arith.constant 0 : i32
    return %arg0, %arg1, %c0_i32 : i32, i32, i32
  }
}

</mosaic_0001>

<bundles_post_ra>
// kernel: tpu_custom_call.1
= control target key start
LH: loop header
LB: loop body
LE: loop exit
PB: predicated region body
PF: predicated region fallthrough
CT: control target
= control target key end

     0   :  { %7 = vsyncpa [#allocation3], 0  ;;  %s946_s0 = inlined_call_operand.hbm [shape: f32[2,8,16], index: 0, kind: input, shape index: {}]   ;;  %s947_s1 = inlined_call_operand.hbm [shape: f32[2,8,32], index: 1, kind: input, shape index: {}]   ;;  %s948_s2 = inlined_call_operand.hbm [shape: f32[2,16,32], index: 2, kind: output, shape index: {}]  }
   0x1   :  { %9 = vsyncpa [#allocation3 + $0x1], 0 }
   0x2   :  { %10 = vsyncpa [#allocation6], 0 }
   0x3   :  { %12 = vsyncpa [#allocation6 + $0x1], 0 }
   0x4   :  { %13 = vsyncpa [#allocation4], 0 }
   0x5   :  { %15 = vsyncpa [#allocation4 + $0x1], 0  ;;  %s723_s9 = smov 0   ;;  %s725_s10 = smov 0  }
   0x6   :  { %s727_s11 = smov 0   ;;  %s729_s12 = smov 0  }
   0x7   :  { %s731_s13 = smov 0   ;;  %s733_s14 = smov 0  }
   0x8 LB: > { %s457_s15 = sadd.s32 4294967295, %s701_s14   ;;  %s458_s16 = sadd.s32 4294967294, %s701_s14   ;;  %s701_s14 = sphi %s733_s14, %s21_s14   ;;  %s697_s13 = sphi %s731_s13, %s968_s13   ;;  %s693_s12 = sphi %s729_s12, %s967_s12   ;;  %s689_s11 = sphi %s727_s11, %s966_s11   ;;  %s685_s10 = sphi %s725_s10, %s965_s10   ;;  %s681_s9 = sphi %s723_s9, %s964_s9  }
   0x9   : > { %s33_s17 = sadd.s32 1, %s697_s13  ;;  %s42_s18 = sadd.s32 1, %s689_s11 }
   0xa   : > { %p35_p0 = scmp.ge.s32.totalorder %s33_s17, 2  ;;  %p49_p1 = scmp.ne.s32.totalorder %s689_s11, %s685_s10 }
   0xb   : > { %p50_p2 = scmp.eq.s32.totalorder %s701_s14, 0  ;;  %p55_p3 = scmp.ne.s32.totalorder %s685_s10, %s681_s9 }
   0xc   : > { %s970_s17 = smov (%p35_p0, %s33_s17), 0  ;;  %p56_p5 = scmp.eq.s32.totalorder %s457_s15, 0 }
   0xd   : > { %p764_p4 = por %p50_p2, %p49_p1  ;;  %s37_s20 = ssub.s32 %s697_s13, %s970_s17 }
   0xe   : > { %p107_p6 = scmp.eq.s32.totalorder %s457_s15, 1  ;;  %p40_p7 = scmp.eq.s32.totalorder %s37_s20, 0 }
   0xf   : > { %p770_p8 = por %p56_p5, %p55_p3  ;;  %p113_p10 = scmp.eq.s32.totalorder %s458_s16, 1 }
  0x10   : > { %p774_p9 = por %p107_p6, %p49_p1  ;;  %p502_p13 = scmp.lt.s32.totalorder %s701_s14, 2 }
  0x11   : > { %s952_s21 = scalar_select %p770_p8, 1, 0 }
  0x12   : > { %s953_s22 = scalar_select %p774_p9, 1, 0 }
  0x13   : > { %s779_s23 = scalar_select %p40_p7, %s689_s11, %s42_s18  }
  0x14   : > { %p781_p11 = por %p113_p10, %p55_p3  ;;  %s788_s25 = sand.u32 1, %s689_s11  }
  0x15   : > { %s461_s26 = sshll.u32 %s788_s25, 3  ;;  %s462_s27 = sshll.u32 %s697_s13, 7 }
  0x16   : > { %s954_s24 = scalar_select %p781_p11, 1, 0 }
  0x17   : > { %s797_s30 = scalar_lea.hbm %s946_s0, %s462_s27  ;;  %s137_s3 = scalar_lea.vmem [#allocation2], %s461_s26 }
  0x18   : > { %s145_s4 = sshll.u32 %s137_s3, 4  ;;  %p805_p0 = pnand %p502_p13, %p764_p4  ;;  %s801_s4 = int_to_ptr.vmem [resolvable:$true] %s145_s4 }
  0x19   : > { %s134_s6 = scalar_lea.sflag [#allocation3], %s788_s25  ;;  %s555_s7 = scalar_lea.hbm %s797_s30, 128 }
  0x1a   : > { %p556_p3 = scmp.ne.s32.totalorder %s797_s30, %s555_s7  ;;  %p557_p5 = pneg %p805_p0 }
  0x1b   : > { %s560_s16 = scalar_lea.hbm %s946_s0, 256  ;;  %p561_p4 = scmp.lt.u32.totalorder %s797_s30, %s946_s0 }
  0x1c   : > { %p558_p6 = pnand %p557_p5, %p556_p3  ;;  %p562_p10 = scmp.lt.u32.totalorder %s560_s16, %s555_s7 }
  0x1d   : > { %p564_p12 = scmp.lt.u32.totalorder %s555_s7, %s797_s30 }
  0x1e   : > { %p559_p7 = pneg %p558_p6  ;;  %p563_p13 = por %p562_p10, %p561_p4 }
  0x20   : > { %p565_p1 = por %p564_p12, %p563_p13 }
  0x22   : > { %p566_p2 = pnand %p565_p1, %p559_p7 }
  0x24   : > { %569 = shalt.err (!%p566_p2)
}
  0x25   : > { %s570_s20 = scalar_lea.vmem %s801_s4, 128  ;;  %s703_s28 = smov [#allocation2]  }
  0x26   : > { %p571_p3 = scmp.ne.s32.totalorder %s801_s4, %s570_s20  ;;  %s575_s29 = sshll.u32 %s703_s28, 4  ;;  %s576_s29 = int_to_ptr.vmem [resolvable:$false] %s575_s29 }
  0x27   : > { %s577_s3 = scalar_lea.vmem %s576_s29, 256  ;;  %p578_p9 = scmp.lt.s32.totalorder %s801_s4, %s576_s29 }
  0x28   : > { %p573_p6 = pnand %p571_p3, %p557_p5  ;;  %p579_p4 = scmp.lt.s32.totalorder %s577_s3, %s570_s20 }
  0x2a   : > { %p574_p11 = pneg %p573_p6  ;;  %p580_p10 = por %p579_p4, %p578_p9 }
  0x2c   : > { %p581_p12 = pnand %p580_p10, %p574_p11 }
  0x2e   : > { %584 = shalt.err (!%p581_p12)
}
  0x2f   : > { %494 = dma.hbm_to_vmem [thread:$0]  (!%p805_p0), %s797_s30, 128, %s801_s4, %s134_s6  }
  0x30   : > { %p956_p1 = scmp.lt.s32.totalorder %s701_s14, 3  ;;  %p957_p2 = scmp.ge.s32.totalorder %s701_s14, 1 }
  0x31   : > { %s850_s16 = scalar_lea.hbm %s947_s1, %s462_s27  ;;  %s156_s18 = scalar_lea.vmem [#allocation5], %s461_s26 }
  0x32   : > { %p841_p7 = pnand %p957_p2, %p956_p1  ;;  %s163_s19 = sshll.u32 %s156_s18, 4  ;;  %s164_s19 = int_to_ptr.vmem [resolvable:$true] %s163_s19 }
  0x33   : > { %s153_s30 = scalar_lea.sflag [#allocation6], %s788_s25  ;;  %s585_s4 = scalar_lea.hbm %s850_s16, 128 }
  0x34   : > { %s958_s7 = scalar_select %p841_p7, 1, 0 }
  0x35   : > { %p586_p9 = scmp.ne.s32.totalorder %s850_s16, %s585_s4  ;;  %s590_s27 = scalar_lea.hbm %s947_s1, 256 }
  0x36   : > { %p591_p3 = scmp.lt.u32.totalorder %s850_s16, %s947_s1  ;;  %p592_p6 = scmp.lt.u32.totalorder %s590_s27, %s585_s4 }
  0x37   : > { %p588_p11 = pnand %p586_p9, %p557_p5  ;;  %p594_p10 = scmp.lt.u32.totalorder %s585_s4, %s850_s16 }
  0x38   : > { %p593_p4 = por %p592_p6, %p591_p3 }
  0x39   : > { %p589_p13 = pneg %p588_p11 }
  0x3a   : > { %p595_p12 = por %p594_p10, %p593_p4 }
  0x3c   : > { %p596_p1 = pnand %p595_p12, %p589_p13 }
  0x3e   : > { %599 = shalt.err (!%p596_p1)
}
  0x3f   : > { %s600_s25 = scalar_lea.vmem %s164_s19, 128  ;;  %s704_s26 = smov [#allocation5]  }
  0x40   : > { %p601_p2 = scmp.ne.s32.totalorder %s164_s19, %s600_s25  ;;  %s605_s3 = sshll.u32 %s704_s26, 4  ;;  %s606_s3 = int_to_ptr.vmem [resolvable:$false] %s605_s3 }
  0x41   : > { %s607_s8 = scalar_lea.vmem %s606_s3, 256  ;;  %p608_p8 = scmp.lt.s32.totalorder %s164_s19, %s606_s3 }
  0x42   : > { %p603_p9 = pnand %p601_p2, %p557_p5  ;;  %p609_p7 = scmp.lt.s32.totalorder %s607_s8, %s600_s25 }
  0x44   : > { %p604_p11 = pneg %p603_p9  ;;  %p610_p3 = por %p609_p7, %p608_p8 }
  0x46   : > { %p611_p6 = pnand %p610_p3, %p604_p11 }
  0x48   : > { %614 = shalt.err (!%p611_p6)
}
  0x49   : > { %497 = dma.hbm_to_vmem [thread:$0]  (!%p805_p0), %s850_s16, 128, %s164_s19, %s153_s30  }
  0x4a   : > { %p959_p13 = scmp.ne.s32.totalorder %s958_s7, 0 }
  0x4b   : > { %s877_s15 = sand.u32 (!%p959_p13), 1, %s685_s10   ;;  %p960_p5 = scmp.ne.s32.totalorder (!%p959_p13), %s952_s21, 0 }
  0x4c   : > { %172 = sbr.rel (%p959_p13) target bundleno = 448 (0x1c0), region = 28  ;;  %s466_s18 = sshll.u32 (!%p959_p13), %s877_s15, 3 }
  0x4d   : > { %s175_s4 = scalar_lea.sflag (!%p959_p13), [#allocation3], %s877_s15  ;;  %s178_s6 = scalar_lea.vmem (!%p959_p13), [#allocation2], %s466_s18 }
  0x53   : > { %668 = dma.done.wait (%p960_p5), %s175_s4, 128  }
  0x54   : > { %670 = vsyncadd (%p960_p5), %s175_s4, 4294967168  ;;  %s184_s5 = scalar_lea.sflag [#allocation6], %s877_s15  ;;  %s187_s16 = scalar_lea.vmem [#allocation5], %s466_s18 }
  0x55   : > { %672 = dma.done.wait (%p960_p5), %s184_s5, 128  }
  0x56   : > { %674 = vsyncadd (%p960_p5), %s184_s5, 4294967168  ;;  %v214_v0 = vld [vmem:[%s178_s6] sm:$0xff]  ;;  %v215_v1 = vld [vmem:[%s187_s16] sm:$0xff]  ;;  %vm248_vm0 = vcmask 64512   ;;  %s468_s7 = sshll.u32 %s877_s15, 4  ;;  %s476_s20 = sshll.u32 %s693_s12, 8 }
  0x57   : > { %216 = vxpose.xlu0.b32.start.end [1/1] (short) (narrow) %v214_v0, 16  ;;  %480 = vmatprep.subr.mxu0 %v215_v1  ;;  %s212_s19 = scalar_lea.vmem [#allocation7], %s468_s7  ;;  %vm330_vm1 = vcmask 261120   ;;  %s897_s28 = scalar_lea.hbm %s948_s2, %s476_s20 }
  0x58   : > { %481 = vmatpush3.msra.mxu0 %v215_v1  ;;  %s349_s30 = sshll.u32 %s212_s19, 4  ;;  %s334_s29 = scalar_lea.sflag [#allocation4], %s877_s15  ;;  %s892_s30 = int_to_ptr.vmem [resolvable:$true] %s349_s30 }
  0x59   : > { %s615_s25 = scalar_lea.vmem %s892_s30, 256  ;;  %p961_p0 = scmp.ne.s32.totalorder %s953_s22, 0 }
  0x5a   : > { %p616_p8 = scmp.ne.s32.totalorder %s892_s30, %s615_s25  ;;  %s705_s12 = smov [#allocation7]  }
  0x5b   : > { %s619_s26 = sshll.u32 %s705_s12, 4  ;;  %s620_s26 = int_to_ptr.vmem [resolvable:$false] %s619_s26 }
  0x5c   : > { %p617_p7 = pnand %p616_p8, %p961_p0  ;;  %s621_s3 = scalar_lea.vmem %s620_s26, 512 }
  0x5d   : > { %p622_p10 = scmp.lt.s32.totalorder %s892_s30, %s620_s26  ;;  %p623_p12 = scmp.lt.s32.totalorder %s621_s3, %s615_s25 }
  0x5e   : > { %p618_p4 = pneg %p617_p7 }
  0x5f   : > { %p624_p1 = por %p623_p12, %p622_p10 }
  0x61   : > { %p625_p2 = pnand %p624_p1, %p618_p4 }
  0xd7   : > { %v232_v2 = vpop.trf.xlu0 }
  0xd8   : > { %482 = vmatprep.mubr.msk.f32.mxu0 %vm248_vm0, %v232_v2 }
  0xdb   : > { %v233_v3 = vpop.trf.xlu0 }
  0xdc   : > { %483 = vmatmul.mubr.msk.f32.vlgmr.msra.gmra.mrb[0].mxu0 %vm248_vm0, %v233_v3 }
 0x1af   : > { %v484_v4 = vpop.f32.mrb[0].mxu0 }
 0x1b0   : > { %332 = vst.msk [vmem:[%s212_s19 + $0x8] sm:$0xff] %vm330_vm1, %v484_v4  ;;  %v321_v5 = vpop.f32.mrb[1].mxu0 }
 0x1b1   : > { %331 = vst.msk [vmem:[%s212_s19] sm:$0xff] %vm330_vm1, %v321_v5 }
 0x1b2   : > { %628 = shalt.err (!%p625_p2)
}
 0x1b3   : > { %s629_s8 = scalar_lea.hbm %s897_s28, 256  ;;  %s633_s6 = scalar_lea.hbm %s948_s2, 512 }
 0x1b4   : > { %p630_p9 = scmp.ne.s32.totalorder %s897_s28, %s629_s8  ;;  %p634_p6 = scmp.lt.u32.totalorder %s897_s28, %s948_s2 }
 0x1b5   : > { %p635_p13 = scmp.lt.u32.totalorder %s633_s6, %s629_s8  ;;  %p637_p8 = scmp.lt.u32.totalorder %s629_s8, %s897_s28 }
 0x1b6   : > { %p631_p11 = pnand %p630_p9, %p961_p0 }
 0x1b7   : > { %p636_p5 = por %p635_p13, %p634_p6 }
 0x1b8   : > { %p632_p3 = pneg %p631_p11 }
 0x1b9   : > { %p638_p7 = por %p637_p8, %p636_p5 }
 0x1bb   : > { %p639_p4 = pnand %p638_p7, %p632_p3 }
 0x1bd   : > { %642 = shalt.err (!%p639_p4)
}
 0x1be   : > { %s706_s7 = smov 128   ;;  %s707_s19 = smov 8  }
 0x1bf   : > { %489 = dma.vmem_to_hbm [thread:$0]  (%p961_p0), %s892_s30, 256, %s897_s28, %s334_s29, %s706_s7, %s706_s7, %s707_s19  }
 0x1c0 PF: > { %s364_s20 = sand.u32 1, %s681_s9   ;;  %p962_p10 = scmp.ne.s32.totalorder %s954_s24, 0 }
 0x1c1   : > { %p963_p12 = scmp.ge.s32.totalorder %s701_s14, 2  ;;  %s365_s21 = scalar_lea.sflag [#allocation4], %s364_s20 }
 0x1c3   : > { %p499_p1 = pnand %p963_p12, %p962_p10 }
 0x1c5   : > { %676 = dma.done.wait (!%p499_p1), %s365_s21, 256  }
 0x1c6   : > { %678 = vsyncadd (!%p499_p1), %s365_s21, 4294967040  ;;  %s21_s14 = sadd.s32 1, %s701_s14   ;;  %s964_s9 = smov %s685_s10 }
 0x1c7   : > { %p18_p2 = scmp.ge.s32.totalorder %s21_s14, 4   ;;  %s965_s10 = smov %s689_s11 }
 0x1c8   : > { %s966_s11 = smov %s779_s23  ;;  %s967_s12 = smov %s697_s13 }
 0x1c9   : > { %s968_s13 = smov %s970_s17  ;;  %20 = sbr.rel (!%p18_p2) target bundleno = 8 (0x8), region = 86 }
 0x1d0   :  { %370 = vsyncpa [#allocation3], 1 }
 0x1d1   :  { %372 = vsyncpa [#allocation3 + $0x1], 1 }
 0x1d2   :  { %373 = vsyncpa [#allocation6], 1 }
 0x1d3   :  { %375 = vsyncpa [#allocation6 + $0x1], 1 }
 0x1d4   :  { %376 = vsyncpa [#allocation4], 1 }
 0x1d5   :  { %378 = vsyncpa [#allocation4 + $0x1], 1 }

</bundles_post_ra>
